<compile_context>
chip_gen: v6e
topology: v6e:2x2x1
jax: 0.10.0
libtpu: 0.0.40
codegen_flags: <defaults>
</compile_context>

<pallas_src>
import functools

import numpy as np

import jax
import jax.numpy as jnp
from jax.experimental import pallas as pl
from jax.experimental.pallas import tpu as pltpu

HEAD = 16


def _round_up(x, m):
    return (x + m - 1) // m * m


def _cdiv(a, b):
    return -(-a // b)


# ----------------------------------------------------------------------------
# Kernel
# ----------------------------------------------------------------------------
def _attention_c_kernel(op_ref, ww_ref, wb_ref,
                        v_ref, q1_ref, w1_ref, b1_ref, out_ref,
                        *, n_heads, inner_bf16):
    """One batch tile: fc1 on the MXU, then an unrolled per-head tanh/accumulate loop.

    Every tanh runs on full (8,128) vregs; fori_loop(unroll=True) keeps LLO visibility
    while bounding temporary live ranges. With inner_bf16 the per-head math runs packed
    bf16 on the VPU/EUP (v6e/v7x); the accumulator and the final sigmoid/weight*v stay f32.
    """
    cdt = jnp.bfloat16 if inner_bf16 else jnp.float32

    v = v_ref[...].astype(jnp.float32)                                   # (TB, N)
    q1p = jnp.dot(q1_ref[...].astype(jnp.float32),
                  w1_ref[...].astype(jnp.float32),
                  preferred_element_type=jnp.float32)                    # fc1 on MXU
    q1p = q1p + b1_ref[...].astype(jnp.float32)

    v_c = v.astype(cdt)
    q1p_c = q1p.astype(cdt)

    def body(h, acc):
        t = jnp.tanh(op_ref[h].astype(cdt) * v_c + q1p_c)                # EUP tanh
        return acc + (ww_ref[h].astype(cdt) * t).astype(jnp.float32)     # f32 accumulate

    acc = jax.lax.fori_loop(0, n_heads, body, jnp.zeros_like(v), unroll=True)
    weight = jax.nn.sigmoid(acc + wb_ref[0])                             # f32
    out_ref[...] = (weight * v).astype(out_ref.dtype)                    # lane-dense store


# ----------------------------------------------------------------------------
# Host-side helpers
# ----------------------------------------------------------------------------
def _maybe_dedup_heads(op_flat, ww_flat):
    """Heads with identical op values give identical tanh(op*v + q1p): sum their ww.

    Exact in real arithmetic; only applied when params are concrete (outside jit).
    Worst case (all op distinct) it is a no-op.
    """
    try:
        op_np = np.asarray(jax.device_get(op_flat), dtype=np.float32)
        ww_np = np.asarray(jax.device_get(ww_flat), dtype=np.float32)
    except Exception:
        return op_flat, ww_flat                      # tracers: cannot dedup
    uniq, inv = np.unique(op_np, return_inverse=True)
    if uniq.shape[0] == op_np.shape[0]:
        return op_flat, ww_flat
    ww_sum = np.zeros_like(uniq)
    np.add.at(ww_sum, inv.reshape(-1), ww_np)
    return jnp.asarray(uniq), jnp.asarray(ww_sum)


def _choose_tiles(B, tile_b):
    """Balanced batch tiles (multiple of 8), >=2 (even) tiles for large B so v7x's
    two TensorCores both get work under dimension_semantics=("parallel",)."""
    if B <= 8:
        return 8, 1
    n_tiles = _cdiv(B, tile_b)
    if B >= 128:
        n_tiles = max(n_tiles, 2)                            # use both TCs on v7x
        if n_tiles % 2 == 1 and _cdiv(B, n_tiles + 1) >= 64:
            n_tiles += 1                                     # avoid odd tile counts
    tb = _round_up(_cdiv(B, n_tiles), 8)                     # balanced -> minimal tail waste
    n_tiles = _cdiv(B, tb)
    return tb, n_tiles


# ----------------------------------------------------------------------------
# Wrapper
# ----------------------------------------------------------------------------
def attention_c(v, q1, params, *, tile_b=2048, inner_bf16=False):
    """v: (B, 1, num_hid), q1: (B, dim) -> (B, 1, num_hid).

    inner_bf16=True trades a little precision for ~2x on the VALU/EUP-bound inner loop
    (recommended on v6e/v7x only; keep False on v5e).
    """
    op, w1, b1, ww, wb = (params["op"], params["fc1_w"], params["fc1_b"],
                          params["w_w"], params["w_b"])
    B, _, N = v.shape
    dim = q1.shape[-1]

    v2 = v.reshape(B, N)
    q1_2d = q1
    w1t = jnp.transpose(w1).astype(jnp.float32)          # (dim, num_hid): MXU does q1 @ W^T
    b1_2d = b1.reshape(1, N).astype(jnp.float32)
    op_flat = op.reshape(-1).astype(jnp.float32)         # (1, head, 1) -> (head,)
    ww_flat = ww.reshape(-1).astype(jnp.float32)         # (1, head)    -> (head,)
    wb_flat = wb.reshape(1).astype(jnp.float32)          # (1,)

    # Host-side dedup of identical op values (constant-1 init collapses 16 heads -> 1).
    op_flat, ww_flat = _maybe_dedup_heads(op_flat, ww_flat)
    n_heads = int(op_flat.shape[0])

    # ---- batch tiling --------------------------------------------------------
    tb, n_tiles = _choose_tiles(B, tile_b)
    b_pad = tb * n_tiles
    if b_pad != B:                                        # pad so tiles divide exactly
        v2 = jnp.pad(v2, ((0, b_pad - B), (0, 0)))
        q1_2d = jnp.pad(q1_2d, ((0, b_pad - B), (0, 0)))

    # ---- honest VMEM request (~1.5x computed footprint, no blanket 32 MiB floor) ----
    f32 = 4
    need = (2 * (tb * N + tb * dim + tb * N)              # double-buffered v / q1 / out tiles
            + dim * N + N                                 # resident fc1 weight + bias
            + 8 * tb * N) * f32                           # kernel temporaries headroom
    vmem_limit = int(min(48 * 1024 * 1024, max(int(1.5 * need), 4 * 1024 * 1024)))

    kernel = functools.partial(_attention_c_kernel,
                               n_heads=n_heads, inner_bf16=inner_bf16)

    out2 = pl.pallas_call(
        kernel,
        out_shape=jax.ShapeDtypeStruct((b_pad, N), v.dtype),
        grid=(n_tiles,),
        in_specs=[
            pl.BlockSpec(memory_space=pltpu.MemorySpace.SMEM),   # op   (n_heads,)
            pl.BlockSpec(memory_space=pltpu.MemorySpace.SMEM),   # w_w  (n_heads,)
            pl.BlockSpec(memory_space=pltpu.MemorySpace.SMEM),   # w_b  (1,)
            pl.BlockSpec((tb, N), lambda i: (i, 0)),             # v       (batch-tiled, pipelined)
            pl.BlockSpec((tb, dim), lambda i: (i, 0)),           # q1      (batch-tiled, pipelined)
            pl.BlockSpec((dim, N), lambda i: (0, 0)),            # fc1 W^T (resident)
            pl.BlockSpec((1, N), lambda i: (0, 0)),              # fc1 b   (resident)
        ],
        out_specs=pl.BlockSpec((tb, N), lambda i: (i, 0)),
        compiler_params=pltpu.CompilerParams(
            dimension_semantics=("parallel",),                   # shard tiles across TCs (v7x)
            vmem_limit_bytes=vmem_limit),
    )(op_flat, ww_flat, wb_flat, v2, q1_2d, w1t, b1_2d)

    return out2[:B].reshape(B, 1, N)


# ----------------------------------------------------------------------------
# Pure-JAX reference mirroring the PyTorch forward exactly
# ----------------------------------------------------------------------------
def attention_c_ref(v, q1, params):
    B = v.shape[0]
    N = params["fc1_w"].shape[0]
    q1_proj = (q1 @ params["fc1_w"].T + params["fc1_b"]).reshape(B, 1, N)
    op = jnp.broadcast_to(params["op"], (B, HEAD, 1))
    score = jnp.tanh(jnp.matmul(op, v) + q1_proj)                     # (B, head, N)
    score = jnp.swapaxes(score, 1, 2)                                 # (B, N, head)
    weight = jax.nn.sigmoid(score @ params["w_w"].T + params["w_b"])  # (B, N, 1)
    weight = jnp.swapaxes(weight, 1, 2)                               # (B, 1, N)
    return weight * v


if __name__ == "__main__":
    key = jax.random.PRNGKey(0)
    k_v, k_q, k_w1, k_b1, k_ww, k_wb, k_v2, k_q2 = jax.random.split(key, 8)

    dim, num_hid = 32, 128
    params = {
        "op": jnp.ones((1, HEAD, 1), dtype=jnp.float32),                      # nn.init.constant(op, 1)
        "fc1_w": jax.random.normal(k_w1, (num_hid, dim), jnp.float32) * 0.1,  # Linear(dim, num_hid)
        "fc1_b": jax.random.normal(k_b1, (num_hid,), jnp.float32) * 0.1,
        "w_w": jax.random.normal(k_ww, (1, HEAD), jnp.float32) * 0.1,         # Linear(head, 1)
        "w_b": jax.random.normal(k_wb, (1,), jnp.float32) * 0.1,
    }

    # --- case 1: tiny batch (B=2) -> padded to one 8-row tile ----------------
    B1 = 2
    v1 = jax.random.normal(k_v, (B1, 1, num_hid), jnp.float32)
    q11 = jax.random.normal(k_q, (B1, dim), jnp.float32)
    out1 = jax.block_until_ready(attention_c(v1, q11, params))
    ref1 = attention_c_ref(v1, q11, params)
    assert out1.shape == (B1, 1, num_hid)
    assert jnp.allclose(out1, ref1, atol=1e-5, rtol=1e-5), "mismatch (tiny batch)"

    # --- case 2: larger batch, balanced multi-tile grid (4 tiles of 72) ------
    B2 = 272
    v2 = jax.random.normal(k_v2, (B2, 1, num_hid), jnp.float32)
    q12 = jax.random.normal(k_q2, (B2, dim), jnp.float32)
    out2 = jax.block_until_ready(attention_c(v2, q12, params, tile_b=128))
    ref2 = attention_c_ref(v2, q12, params)
    assert out2.shape == (B2, 1, num_hid)
    assert jnp.allclose(out2, ref2, atol=1e-5, rtol=1e-5), "mismatch (multi-tile)"

    # --- case 3: optional bf16 inner-compute path (v6e/v7x), looser tolerance -
    out3 = jax.block_until_ready(attention_c(v2, q12, params, inner_bf16=True))
    assert out3.shape == (B2, 1, num_hid)
    assert jnp.allclose(out3, ref2, atol=5e-2, rtol=5e-2), "mismatch (bf16 path)"

    print("KERNEL_OK")
</pallas_src>

<mosaic_0001>
module attributes {stable_mosaic.version = 11 : i64} {
  func.func @_attention_c_kernel(%arg0: i32, %arg1: memref<1xf32, #tpu.memory_space<smem>>, %arg2: memref<1xf32, #tpu.memory_space<smem>>, %arg3: memref<1xf32, #tpu.memory_space<smem>>, %arg4: memref<8x128xf32, #tpu.memory_space<vmem>>, %arg5: memref<8x32xf32, #tpu.memory_space<vmem>>, %arg6: memref<32x128xf32, #tpu.memory_space<vmem>>, %arg7: memref<1x128xf32, #tpu.memory_space<vmem>>, %arg8: memref<8x128xf32, #tpu.memory_space<vmem>>) attributes {dimension_semantics = [#tpu.dimension_semantics<parallel>], iteration_bounds = array<i64: 1>, scalar_prefetch = 0 : i64, scratch_operands = 0 : i64, tpu.core_type = #tpu.core_type<tc>, window_params = [{transform_indices = @transform_0, window_bounds = array<i64: 1>}, {transform_indices = @transform_1, window_bounds = array<i64: 1>}, {transform_indices = @transform_2, window_bounds = array<i64: 1>}, {transform_indices = @transform_3, window_bounds = array<i64: 8, 128>}, {transform_indices = @transform_4, window_bounds = array<i64: 8, 32>}, {pipeline_mode = #tpu.pipeline_mode<synchronous>, transform_indices = @transform_5, window_bounds = array<i64: 32, 128>}, {pipeline_mode = #tpu.pipeline_mode<synchronous>, transform_indices = @transform_6, window_bounds = array<i64: 1, 128>}, {transform_indices = @transform_7, window_bounds = array<i64: 8, 128>}]} {
    %c0 = arith.constant 0 : index
    %c0_0 = arith.constant 0 : index
    %0 = vector.load %arg4[%c0, %c0_0] : memref<8x128xf32, #tpu.memory_space<vmem>>, vector<8x128xf32>
    %c0_1 = arith.constant 0 : index
    %c0_2 = arith.constant 0 : index
    %1 = vector.load %arg5[%c0_1, %c0_2] : memref<8x32xf32, #tpu.memory_space<vmem>>, vector<8x32xf32>
    %c0_3 = arith.constant 0 : index
    %c0_4 = arith.constant 0 : index
    %2 = vector.load %arg6[%c0_3, %c0_4] : memref<32x128xf32, #tpu.memory_space<vmem>>, vector<32x128xf32>
    %cst = arith.constant dense<0.000000e+00> : vector<8x128xf32>
    %3 = tpu.matmul %1, %2, %cst {dimension_numbers = #tpu.dot_dimension_numbers<[1], [0], [0], [1], [0, 0, 1, 1], [], []>} : vector<8x32xf32>, vector<32x128xf32>, vector<8x128xf32> -> vector<8x128xf32>
    %c0_5 = arith.constant 0 : index
    %c0_6 = arith.constant 0 : index
    %4 = vector.load %arg7[%c0_5, %c0_6] : memref<1x128xf32, #tpu.memory_space<vmem>>, vector<1x128xf32>
    %5 = vector.broadcast %4 : vector<1x128xf32> to vector<8x128xf32>
    %6 = arith.addf %3, %5 : vector<8x128xf32>
    %cst_7 = arith.constant 0.000000e+00 : f32
    %7 = vector.broadcast %cst_7 : f32 to vector<8x128xf32>
    %c0_i32 = arith.constant 0 : i32
    %8 = arith.index_cast %c0_i32 : i32 to index
    %9 = memref.load %arg1[%8] : memref<1xf32, #tpu.memory_space<smem>>
    %10 = vector.broadcast %9 : f32 to vector<8x128xf32>
    %11 = arith.mulf %10, %0 : vector<8x128xf32>
    %12 = arith.addf %11, %6 : vector<8x128xf32>
    %13 = math.tanh %12 : vector<8x128xf32>
    %14 = arith.index_cast %c0_i32 : i32 to index
    %15 = memref.load %arg2[%14] : memref<1xf32, #tpu.memory_space<smem>>
    %16 = vector.broadcast %15 : f32 to vector<8x128xf32>
    %17 = arith.mulf %16, %13 : vector<8x128xf32>
    %18 = arith.addf %7, %17 : vector<8x128xf32>
    %c1_i32 = arith.constant 1 : i32
    %c0_8 = arith.constant 0 : index
    %19 = memref.load %arg3[%c0_8] : memref<1xf32, #tpu.memory_space<smem>>
    %20 = vector.broadcast %19 : f32 to vector<8x128xf32>
    %21 = arith.addf %18, %20 : vector<8x128xf32>
    %22 = arith.negf %21 : vector<8x128xf32>
    %23 = math.exp %22 : vector<8x128xf32>
    %cst_9 = arith.constant 1.000000e+00 : f32
    %24 = vector.broadcast %cst_9 : f32 to vector<8x128xf32>
    %25 = arith.addf %24, %23 : vector<8x128xf32>
    %26 = arith.divf %24, %25 : vector<8x128xf32>
    %27 = arith.mulf %26, %0 : vector<8x128xf32>
    %c0_10 = arith.constant 0 : index
    %c0_11 = arith.constant 0 : index
    %28 = vector.load %arg8[%c0_10, %c0_11] : memref<8x128xf32, #tpu.memory_space<vmem>>, vector<8x128xf32>
    tpu.vector_store %arg8[%c0_10, %c0_11], %27 {strides = array<i32>} : memref<8x128xf32, #tpu.memory_space<vmem>>, vector<8x128xf32>,
    return
  }
  func.func @transform_0(%arg0: i32) -> i32 {
    %c0_i32 = arith.constant 0 : i32
    %c0_i32_0 = arith.constant 0 : i32
    return %c0_i32 : i32
  }
  func.func @transform_1(%arg0: i32) -> i32 {
    %c0_i32 = arith.constant 0 : i32
    %c0_i32_0 = arith.constant 0 : i32
    return %c0_i32 : i32
  }
  func.func @transform_2(%arg0: i32) -> i32 {
    %c0_i32 = arith.constant 0 : i32
    %c0_i32_0 = arith.constant 0 : i32
    return %c0_i32 : i32
  }
  func.func @transform_3(%arg0: i32) -> (i32, i32) {
    %c0_i32 = arith.constant 0 : i32
    %c0_i32_0 = arith.constant 0 : i32
    return %arg0, %c0_i32 : i32, i32
  }
  func.func @transform_4(%arg0: i32) -> (i32, i32) {
    %c0_i32 = arith.constant 0 : i32
    %c0_i32_0 = arith.constant 0 : i32
    return %arg0, %c0_i32 : i32, i32
  }
  func.func @transform_5(%arg0: i32) -> (i32, i32) {
    %c0_i32 = arith.constant 0 : i32
    %c0_i32_0 = arith.constant 0 : i32
    %c0_i32_1 = arith.constant 0 : i32
    return %c0_i32, %c0_i32_0 : i32, i32
  }
  func.func @transform_6(%arg0: i32) -> (i32, i32) {
    %c0_i32 = arith.constant 0 : i32
    %c0_i32_0 = arith.constant 0 : i32
    %c0_i32_1 = arith.constant 0 : i32
    return %c0_i32, %c0_i32_0 : i32, i32
  }
  func.func @transform_7(%arg0: i32) -> (i32, i32) {
    %c0_i32 = arith.constant 0 : i32
    %c0_i32_0 = arith.constant 0 : i32
    return %arg0, %c0_i32 : i32, i32
  }
}

</mosaic_0001>

<bundles_post_ra>
// kernel: tpu_custom_call.1
= control target key start
LH: loop header
LB: loop body
LE: loop exit
PB: predicated region body
PF: predicated region fallthrough
CT: control target
= control target key end

     0   :  { %15 = vsyncpa [#allocation6], 0  ;;  %s381_s0 = inlined_call_operand.<no memory space> [shape: f32[1], index: 0, kind: input, shape index: {}]   ;;  %s382_s1 = inlined_call_operand.<no memory space> [shape: f32[1], index: 1, kind: input, shape index: {}]   ;;  %s383_s2 = inlined_call_operand.<no memory space> [shape: f32[1], index: 2, kind: input, shape index: {}]   ;;  %s384_s3 = inlined_call_operand.hbm [shape: f32[8,128], index: 3, kind: input, shape index: {}]   ;;  %s385_s4 = inlined_call_operand.hbm [shape: f32[8,32], index: 4, kind: input, shape index: {}]   ;;  %s386_s5 = inlined_call_operand.hbm [shape: f32[32,128], index: 5, kind: input, shape index: {}]   ;;  %s387_s6 = inlined_call_operand.vmem [shape: f32[1,128], index: 6, kind: input, shape index: {}]   ;;  %s388_s7 = inlined_call_operand.hbm [shape: f32[8,128], index: 7, kind: output, shape index: {}]  }
   0x1   :  { %16 = vsyncpa [#allocation9], 0 }
   0x2   :  { %17 = vsyncpa [#allocation7], 0  ;;  %s309_s24 = smov [#allocation8]   ;;  %s310_s26 = smov [#allocation5]  }
   0x3   :  { %s40_s25 = sshll.u32 %s309_s24, 4  ;;  %s30_s27 = sshll.u32 %s310_s26, 4  ;;  %s41_s25 = int_to_ptr.vmem [resolvable:$true] %s40_s25  ;;  %s31_s27 = int_to_ptr.vmem [resolvable:$true] %s30_s27 }
   0x4   :  { %s231_s28 = scalar_lea.vmem %s41_s25, 128  ;;  %p236_p1 = scmp.lt.s32.totalorder %s41_s25, %s41_s25 }
   0x5   :  { %p232_p0 = scmp.ne.s32.totalorder %s41_s25, %s231_s28  ;;  %p237_p2 = scmp.lt.s32.totalorder %s231_s28, %s231_s28 }
   0x7   :  { %p238_p3 = por %p237_p2, %p236_p1 }
   0x9   :  { %p239_p4 = pnand %p238_p3, %p232_p0 }
   0xb   :  { %242 = shalt.err (!%p239_p4)
}
   0xc   :  { %43 = dma.hbm_to_vmem [thread:$0]  %s385_s4, 128, %s41_s25, [#allocation9]  }
   0xd   :  { %s251_s8 = scalar_lea.vmem %s31_s27, 128  ;;  %p256_p6 = scmp.lt.s32.totalorder %s31_s27, %s31_s27 }
   0xe   :  { %p252_p5 = scmp.ne.s32.totalorder %s31_s27, %s251_s8  ;;  %p257_p7 = scmp.lt.s32.totalorder %s251_s8, %s251_s8 }
  0x10   :  { %p258_p8 = por %p257_p7, %p256_p6 }
  0x12   :  { %p259_p9 = pnand %p258_p8, %p252_p5 }
  0x14   :  { %262 = shalt.err (!%p259_p9)
}
  0x15   :  { %33 = dma.hbm_to_vmem [thread:$0]  %s384_s3, 128, %s31_s27, [#allocation6]  }
  0x16   :  { %s311_s11 = smov [#allocation10]  }
  0x17   :  { %s49_s12 = sshll.u32 %s311_s11, 4  ;;  %s50_s12 = int_to_ptr.vmem [resolvable:$true] %s49_s12 }
  0x18   :  { %s271_s13 = scalar_lea.vmem %s50_s12, 512  ;;  %p276_p11 = scmp.lt.s32.totalorder %s50_s12, %s50_s12 }
  0x19   :  { %p272_p10 = scmp.ne.s32.totalorder %s50_s12, %s271_s13  ;;  %p277_p12 = scmp.lt.s32.totalorder %s271_s13, %s271_s13 }
  0x1b   :  { %p278_p13 = por %p277_p12, %p276_p11 }
  0x1d   :  { %p279_p0 = pnand %p278_p13, %p272_p10 }
  0x1f   :  { %282 = shalt.err (!%p279_p0)
}
  0x20   :  { %s312_s4 = smov 128   ;;  %s313_s14 = smov 8  }
  0x21   :  { %55 = dma.hbm_to_vmem [thread:$0]  %s386_s5, 512, %s50_s12, [#allocation9], %s312_s4, %s312_s4, %s313_s14  }
  0x22   :  { %303 = dma.done.wait [#allocation6], 128  }
  0x23   :  { %304 = vsyncadd [#allocation6], 4294967168 }
  0x24   :  { %305 = dma.done.wait [#allocation9], 640  }
  0x25   :  { %306 = vsyncadd [#allocation9], 4294966656  ;;  %v314_v0 = vmov 0.0   ;;  %vm315_vm0 = vmmov 0   ;;  %v72_v1 = vld [vmem:[#allocation10 + $0x18] sm:$0xff]  ;;  %v71_v2 = vld [vmem:[#allocation10 + $0x10] sm:$0xff]  ;;  %v155_v7 = vstv %s381_s0  ;;  %v160_v14 = vstv %s382_s1 }
  0x26   :  { %198 = vmatprep.subr.mxu0 %v314_v0  ;;  %206 = vmatprep.mubr.msk.f32.mxu0 %vm315_vm0, %v314_v0  ;;  %v70_v3 = vld [vmem:[#allocation10 + $0x8] sm:$0xff]  ;;  %v69_v4 = vld [vmem:[#allocation10] sm:$0xff]  ;;  %v68_v5 = vld [vmem:[#allocation8] sm:$0xff]  ;;  %vm80_vm1 = vcmask 261120   ;;  %v164_v16 = vstv %s383_s2  ;;  %s316_s0 = smov [#allocation11]  }
  0x27   :  { %199 = vmatpush3.msra.mxu0 %v72_v1  ;;  %v67_v6 = vld [vmem:[#allocation5] sm:$0xff] }
  0x28   :  { %200 = vmatprep.subr.mxu0 %v314_v0  ;;  %v190_v8 = vld [vmem:[%s387_s6] ss:$0 sm:$0xff]  ;;  %v156_v9 = vmul.f32 %v155_v7, %v67_v6  ;;  %s180_s6 = sshll.u32 %s316_s0, 4  ;;  %s181_s6 = int_to_ptr.vmem [resolvable:$true] %s180_s6 }
  0x29   :  { %201 = vmatpush3.msra.mxu0 %v71_v2  ;;  %s283_s23 = scalar_lea.vmem %s181_s6, 128  ;;  %p288_p2 = scmp.lt.s32.totalorder %s181_s6, %s181_s6 }
  0x2a   :  { %202 = vmatprep.subr.mxu0 %v314_v0  ;;  %p284_p1 = scmp.ne.s32.totalorder %s181_s6, %s283_s23  ;;  %p289_p3 = scmp.lt.s32.totalorder %s283_s23, %s283_s23 }
  0x2b   :  { %203 = vmatpush3.msra.mxu0 %v70_v3 }
  0x2c   :  { %204 = vmatprep.subr.mxu0 %v314_v0  ;;  %p290_p4 = por %p289_p3, %p288_p2 }
  0x2d   :  { %205 = vmatpush3.msra.mxu0 %v69_v4 }
  0x2e   :  { %207 = vmatmul.mubr.msk.f32.vlgmr.msra.gmra.mxu0 %vm80_vm1, %v68_v5  ;;  %p291_p5 = pnand %p290_p4, %p284_p1 }
  0xee   :  { %v150_v10 = vpop.f32.mrf.mxu0 }
  0xef   :  { %v151_v11 = vadd.f32 %v190_v8, %v150_v10 }
  0xf0   :  { %v208_v12 = vpop.f32.mrf.mxu0 }
  0xf1   :  { %v157_v13 = vadd.f32 %v156_v9, %v151_v11 }
  0xf3   :  { %217 = vtanh.f32 %v157_v13 }
 0x100   :  { %v218_v15 = vpop.eup %217 }
 0x101   :  { %v161_v17 = vmul.f32 %v218_v15, %v160_v14 }
 0x103   :  { %v165_v18 = vadd.f32 %v164_v16, %v161_v17 }
 0x105   :  { %v192_v19 = vmul.f32 -1.442695, %v165_v18 }
 0x107   :  { %219 = vpow2.f32 %v192_v19 }
 0x114   :  { %v220_v20 = vpop.eup %219 }
 0x115   :  { %v169_v21 = vadd.f32 1.0, %v220_v20 }
 0x117   :  { %221 = vrcp.f32 %v169_v21 }
 0x124   :  { %v222_v22 = vpop.eup %221 }
 0x125   :  { %v172_v23 = vmul.f32 %v222_v22, %v67_v6 }
 0x127   :  { %173 = vst [vmem:[#allocation11] sm:$0xff] %v172_v23 }
 0x128   :  { %294 = shalt.err (!%p291_p5)
}
 0x129   :  { %183 = dma.vmem_to_hbm [thread:$0]  %s181_s6, 128, %s388_s7, [#allocation7]  }
 0x12a   :  { %307 = dma.done.wait [#allocation7], 128  }
 0x12b   :  { %308 = vsyncadd [#allocation7], 4294967168 }
 0x12c   :  { %187 = vsyncpa [#allocation6], 1 }
 0x12d   :  { %188 = vsyncpa [#allocation9], 1 }
 0x12e   :  { %189 = vsyncpa [#allocation7], 1 }

</bundles_post_ra>
